<compile_context>
chip_gen: v7x
topology: tpu7x:2x2x1
jax: 0.10.0
libtpu: 0.0.40
codegen_flags: <defaults>
</compile_context>

<pallas_src>
import jax
import jax.numpy as jnp
from jax.experimental import pallas as pl
from jax.experimental.pallas import tpu as pltpu

_VMEM_LIMIT = 64 * 1024 * 1024


# ----------------------------------------------------------------------------
# Kernel 1: time-parallel projection  o[t] = x[t] @ W + b   (grid over time
# blocks, "parallel" semantics).  Used for both the input projection (fused
# LSTM bias) and the Linear output head.
# ----------------------------------------------------------------------------
def _proj_kernel(x_ref, w_ref, b_ref, o_ref):
    t_blk, bsz, in_dim = x_ref.shape
    out_dim = o_ref.shape[-1]
    w = w_ref[...]
    # Flatten (T_BLK, B) -> rows so the MXU sees one big matmul per block.
    x2 = x_ref[...].reshape(t_blk * bsz, in_dim).astype(w.dtype)
    y = jnp.dot(x2, w, preferred_element_type=jnp.float32) + b_ref[...]
    o_ref[...] = y.reshape(t_blk, bsz, out_dim).astype(o_ref.dtype)


def _projection(x, w, b, *, t_blk):
    """x: (S, B, in) -> (S, B, out) with o = x @ w + b, S % t_blk == 0."""
    s, bsz, in_dim = x.shape
    out_dim = w.shape[1]
    n_tb = s // t_blk
    cost = pl.CostEstimate(
        flops=2 * s * bsz * in_dim * out_dim,
        transcendentals=0,
        bytes_accessed=int(x.size * x.dtype.itemsize
                           + w.size * w.dtype.itemsize
                           + b.size * b.dtype.itemsize
                           + s * bsz * out_dim * 4),
    )
    return pl.pallas_call(
        _proj_kernel,
        out_shape=jax.ShapeDtypeStruct((s, bsz, out_dim), jnp.float32),
        grid_spec=pltpu.PrefetchScalarGridSpec(
            num_scalar_prefetch=0,
            grid=(n_tb,),
            in_specs=[
                pl.BlockSpec((t_blk, bsz, in_dim), lambda tb: (tb, 0, 0)),
                pl.BlockSpec((in_dim, out_dim), lambda tb: (0, 0)),
                pl.BlockSpec((1, out_dim), lambda tb: (0, 0)),
            ],
            out_specs=pl.BlockSpec((t_blk, bsz, out_dim), lambda tb: (tb, 0, 0)),
        ),
        compiler_params=pltpu.CompilerParams(
            dimension_semantics=("parallel",),
            vmem_limit_bytes=_VMEM_LIMIT,
        ),
        cost_estimate=cost,
    )(x, w, b)


# ----------------------------------------------------------------------------
# Kernel 2: the sequential LSTM recurrence.  Per grid step it consumes a
# (T_BLK, B, 4H) slab of precomputed input gates, runs T_BLK unrolled steps of
#   gates = gx_t + h_{t-1} @ W_hh^T ; i,f,g,o ; c,h update
# and writes the T_BLK hidden states.  h/c state lives in VMEM scratch that
# persists across the (sequential, "arbitrary") time-block grid.
# ----------------------------------------------------------------------------
def _lstm_recurrence_kernel(gx_ref, w_hh_ref, h_out_ref, h_scr, c_scr):
    t_blk = gx_ref.shape[0]
    hidden = h_scr.shape[-1]

    @pl.when(pl.program_id(0) == 0)
    def _():
        h_scr[...] = jnp.zeros_like(h_scr)
        c_scr[...] = jnp.zeros_like(c_scr)

    # Weight stays resident in VMEM (constant index_map -> copied once).
    w_hh = w_hh_ref[...]
    h = h_scr[...]
    c = c_scr[...]

    # Fully-unrolled inner time loop: static indices, single small matmul per
    # step on the dependency chain, gate math in f32 on VPU/EUP.
    for s in range(t_blk):
        gates = gx_ref[s] + jnp.dot(h.astype(w_hh.dtype), w_hh,
                                    preferred_element_type=jnp.float32)
        # PyTorch gate order: input, forget, cell(g), output.
        i_g = jax.nn.sigmoid(gates[:, 0 * hidden:1 * hidden])
        f_g = jax.nn.sigmoid(gates[:, 1 * hidden:2 * hidden])
        g_g = jnp.tanh(gates[:, 2 * hidden:3 * hidden])
        o_g = jax.nn.sigmoid(gates[:, 3 * hidden:4 * hidden])
        c = f_g * c + i_g * g_g
        h = o_g * jnp.tanh(c)
        h_out_ref[s] = h.astype(h_out_ref.dtype)

    # Carry state to the next time block (one scratch store per block).
    h_scr[...] = h
    c_scr[...] = c


# ----------------------------------------------------------------------------
# Forward wrapper:  input projection -> recurrence -> linear head.
# ----------------------------------------------------------------------------
def lstm_rnn_forward(x, params, *, t_blk=8, weight_dtype=jnp.float32):
    """x: (seq_len, batch, input_size) float32 -> (seq_len, batch, output)."""
    seq_len, batch, input_size = x.shape
    hidden = params["w_hh_t"].shape[0]
    output_size = params["w_lin_t"].shape[1]

    # weight_dtype=jnp.bfloat16 is the recommended production setting on
    # v6e/v7x (MXU-native, halves weight VMEM/DMA); f32 here for exactness.
    w_ih = params["w_ih_t"].astype(weight_dtype)
    w_hh = params["w_hh_t"].astype(weight_dtype)
    w_lin = params["w_lin_t"].astype(weight_dtype)
    # Fold the two LSTM biases together; biases stay f32 (added post-matmul).
    b_gates = (params["b_ih"] + params["b_hh"]).reshape(1, 4 * hidden) \
        .astype(jnp.float32)
    b_lin = params["b_lin"].reshape(1, output_size).astype(jnp.float32)

    # Pad the time axis to a multiple of the time block (padded outputs are
    # computed but discarded; they never feed back into earlier steps).
    t_blk = min(t_blk, seq_len)
    s_pad = pl.cdiv(seq_len, t_blk) * t_blk
    if s_pad != seq_len:
        x = jnp.pad(x, ((0, s_pad - seq_len), (0, 0), (0, 0)))
    n_tb = s_pad // t_blk

    # 1) Hoisted, time-parallel input projection (bias folded in).
    gx = _projection(x, w_ih, b_gates, t_blk=t_blk)          # (S_pad, B, 4H)

    # 2) Sequential recurrence: emits hidden states only.
    rec_cost = pl.CostEstimate(
        flops=2 * s_pad * batch * hidden * 4 * hidden
        + 12 * s_pad * batch * hidden,
        transcendentals=5 * s_pad * batch * hidden,
        bytes_accessed=int(gx.size * 4
                           + w_hh.size * w_hh.dtype.itemsize
                           + s_pad * batch * hidden * 4),
    )
    h_all = pl.pallas_call(
        _lstm_recurrence_kernel,
        out_shape=jax.ShapeDtypeStruct((s_pad, batch, hidden), jnp.float32),
        grid_spec=pltpu.PrefetchScalarGridSpec(
            num_scalar_prefetch=0,
            grid=(n_tb,),
            in_specs=[
                pl.BlockSpec((t_blk, batch, 4 * hidden), lambda tb: (tb, 0, 0)),
                pl.BlockSpec((hidden, 4 * hidden), lambda tb: (0, 0)),
            ],
            out_specs=pl.BlockSpec((t_blk, batch, hidden), lambda tb: (tb, 0, 0)),
            scratch_shapes=[
                pltpu.VMEM((batch, hidden), jnp.float32),   # h state
                pltpu.VMEM((batch, hidden), jnp.float32),   # c state
            ],
        ),
        compiler_params=pltpu.CompilerParams(
            dimension_semantics=("arbitrary",),   # recurrence -> sequential
            vmem_limit_bytes=_VMEM_LIMIT,
        ),
        cost_estimate=rec_cost,
    )(gx, w_hh)

    # 3) Hoisted, time-parallel Linear head over all hidden states at once.
    y = _projection(h_all, w_lin, b_lin, t_blk=t_blk)        # (S_pad, B, O)
    return y[:seq_len]


# ----------------------------------------------------------------------------
# Params + pure-JAX reference.
# ----------------------------------------------------------------------------
def make_params(key, input_size, hidden_size, output_size):
    """Deterministic init mirroring PyTorch's U(-1/sqrt(H), 1/sqrt(H)) scheme."""
    ks = jax.random.split(key, 6)
    stdv = 1.0 / jnp.sqrt(jnp.float32(hidden_size))
    u = lambda k, shape: jax.random.uniform(k, shape, jnp.float32, -stdv, stdv)
    # Stored pre-transposed so kernels compute x @ W_t directly (== x @ W^T).
    return {
        "w_ih_t": u(ks[0], (input_size, 4 * hidden_size)),
        "w_hh_t": u(ks[1], (hidden_size, 4 * hidden_size)),
        "b_ih": u(ks[2], (4 * hidden_size,)),
        "b_hh": u(ks[3], (4 * hidden_size,)),
        "w_lin_t": u(ks[4], (hidden_size, output_size)),
        "b_lin": u(ks[5], (output_size,)),
    }


def lstm_rnn_reference(x, params):
    """Pure-JAX reference (lax.scan) for correctness checking."""
    hidden = params["w_hh_t"].shape[0]
    batch = x.shape[1]
    b = params["b_ih"] + params["b_hh"]

    def step(carry, x_t):
        h, c = carry
        gates = x_t @ params["w_ih_t"] + h @ params["w_hh_t"] + b
        i_g = jax.nn.sigmoid(gates[:, 0 * hidden:1 * hidden])
        f_g = jax.nn.sigmoid(gates[:, 1 * hidden:2 * hidden])
        g_g = jnp.tanh(gates[:, 2 * hidden:3 * hidden])
        o_g = jax.nn.sigmoid(gates[:, 3 * hidden:4 * hidden])
        c_new = f_g * c + i_g * g_g
        h_new = o_g * jnp.tanh(c_new)
        y = h_new @ params["w_lin_t"] + params["b_lin"]
        return (h_new, c_new), y

    init = (jnp.zeros((batch, hidden), jnp.float32),
            jnp.zeros((batch, hidden), jnp.float32))
    _, ys = jax.lax.scan(step, init, x)
    return ys


if __name__ == "__main__":
    configs = [
        # Preferred layout: hidden % 128 == 0 (lane-aligned gate slices),
        # batch % 8 == 0 (sublane-aligned), multiple time blocks.
        dict(seq_len=16, batch=8, input_size=16, hidden_size=128,
             output_size=8, t_blk=8),
        # Small unaligned config: exercises time-axis padding and sub-tile dims.
        dict(seq_len=6, batch=4, input_size=16, hidden_size=32,
             output_size=8, t_blk=4),
    ]

    key = jax.random.PRNGKey(0)
    for cfg in configs:
        key, kx, kp = jax.random.split(key, 3)
        x = jax.random.normal(
            kx, (cfg["seq_len"], cfg["batch"], cfg["input_size"]), jnp.float32)
        params = make_params(kp, cfg["input_size"], cfg["hidden_size"],
                             cfg["output_size"])

        y = jax.block_until_ready(
            lstm_rnn_forward(x, params, t_blk=cfg["t_blk"]))
        y_ref = jax.block_until_ready(lstm_rnn_reference(x, params))

        assert y.shape == (cfg["seq_len"], cfg["batch"], cfg["output_size"])
        assert jnp.allclose(y, y_ref, atol=1e-4, rtol=1e-4), \
            f"mismatch vs reference for {cfg}"

    print("KERNEL_OK")
</pallas_src>

<mosaic_0001>
module attributes {stable_mosaic.version = 11 : i64} {
  func.func @_proj_kernel(%arg0: i32, %arg1: memref<8x8x16xf32, #tpu.memory_space<vmem>>, %arg2: memref<16x512xf32, #tpu.memory_space<vmem>>, %arg3: memref<1x512xf32, #tpu.memory_space<vmem>>, %arg4: memref<8x8x512xf32, #tpu.memory_space<vmem>>) attributes {dimension_semantics = [#tpu.dimension_semantics<parallel>], iteration_bounds = array<i64: 2>, scalar_prefetch = 0 : i64, scratch_operands = 0 : i64, tpu.core_type = #tpu.core_type<tc>, window_params = [{transform_indices = @transform_0, window_bounds = array<i64: 8, 8, 16>}, {pipeline_mode = #tpu.pipeline_mode<synchronous>, transform_indices = @transform_1, window_bounds = array<i64: 16, 512>}, {pipeline_mode = #tpu.pipeline_mode<synchronous>, transform_indices = @transform_2, window_bounds = array<i64: 1, 512>}, {transform_indices = @transform_3, window_bounds = array<i64: 8, 8, 512>}]} {
    %c0 = arith.constant 0 : index
    %c0_0 = arith.constant 0 : index
    %0 = vector.load %arg2[%c0, %c0_0] : memref<16x512xf32, #tpu.memory_space<vmem>>, vector<16x512xf32>
    %c0_1 = arith.constant 0 : index
    %c0_2 = arith.constant 0 : index
    %c0_3 = arith.constant 0 : index
    %1 = vector.load %arg1[%c0_1, %c0_2, %c0_3] : memref<8x8x16xf32, #tpu.memory_space<vmem>>, vector<8x8x16xf32>
    %2 = vector.shape_cast %1 : vector<8x8x16xf32> to vector<64x16xf32>
    %cst = arith.constant dense<0.000000e+00> : vector<64x512xf32>
    %3 = tpu.matmul %2, %0, %cst {dimension_numbers = #tpu.dot_dimension_numbers<[1], [0], [0], [1], [0, 0, 1, 1], [], []>} : vector<64x16xf32>, vector<16x512xf32>, vector<64x512xf32> -> vector<64x512xf32>
    %c0_4 = arith.constant 0 : index
    %c0_5 = arith.constant 0 : index
    %4 = vector.load %arg3[%c0_4, %c0_5] : memref<1x512xf32, #tpu.memory_space<vmem>>, vector<1x512xf32>
    %5 = vector.broadcast %4 : vector<1x512xf32> to vector<64x512xf32>
    %6 = arith.addf %3, %5 : vector<64x512xf32>
    %7 = vector.shape_cast %6 : vector<64x512xf32> to vector<8x8x512xf32>
    %c0_6 = arith.constant 0 : index
    %c0_7 = arith.constant 0 : index
    %c0_8 = arith.constant 0 : index
    %8 = vector.load %arg4[%c0_6, %c0_7, %c0_8] : memref<8x8x512xf32, #tpu.memory_space<vmem>>, vector<8x8x512xf32>
    tpu.vector_store %arg4[%c0_6, %c0_7, %c0_8], %7 {strides = array<i32>} : memref<8x8x512xf32, #tpu.memory_space<vmem>>, vector<8x8x512xf32>,
    return
  }
  func.func @transform_0(%arg0: i32) -> (i32, i32, i32) {
    %c0_i32 = arith.constant 0 : i32
    %c0_i32_0 = arith.constant 0 : i32
    %c0_i32_1 = arith.constant 0 : i32
    return %arg0, %c0_i32, %c0_i32_0 : i32, i32, i32
  }
  func.func @transform_1(%arg0: i32) -> (i32, i32) {
    %c0_i32 = arith.constant 0 : i32
    %c0_i32_0 = arith.constant 0 : i32
    %c0_i32_1 = arith.constant 0 : i32
    return %c0_i32, %c0_i32_0 : i32, i32
  }
  func.func @transform_2(%arg0: i32) -> (i32, i32) {
    %c0_i32 = arith.constant 0 : i32
    %c0_i32_0 = arith.constant 0 : i32
    %c0_i32_1 = arith.constant 0 : i32
    return %c0_i32, %c0_i32_0 : i32, i32
  }
  func.func @transform_3(%arg0: i32) -> (i32, i32, i32) {
    %c0_i32 = arith.constant 0 : i32
    %c0_i32_0 = arith.constant 0 : i32
    %c0_i32_1 = arith.constant 0 : i32
    return %arg0, %c0_i32, %c0_i32_0 : i32, i32, i32
  }
}

</mosaic_0001>

<bundles_post_ra>
// kernel: tpu_custom_call.1
= control target key start
LH: loop header
LB: loop body
LE: loop exit
PB: predicated region body
PF: predicated region fallthrough
CT: control target
= control target key end

     0   :  { %8 = vsyncpa [#allocation3], 0  ;;  %s1291_s0 = inlined_call_operand.hbm [shape: f32[16,8,16], index: 0, kind: input, shape index: {}]   ;;  %s1292_s1 = inlined_call_operand.hbm [shape: f32[16,512], index: 1, kind: input, shape index: {}]   ;;  %s1293_s2 = inlined_call_operand.hbm [shape: f32[1,512], index: 2, kind: input, shape index: {}]   ;;  %s1294_s3 = inlined_call_operand.hbm [shape: f32[16,8,512], index: 3, kind: output, shape index: {}]  }
   0x1   :  { %10 = vsyncpa [#allocation3 + $0x1], 0 }
   0x2   :  { %11 = vsyncpa [#allocation6], 0 }
   0x3   :  { %12 = vsyncpa [#allocation4], 0 }
   0x4   :  { %14 = vsyncpa [#allocation4 + $0x1], 0  ;;  %s955_s12 = smov 0   ;;  %s957_s13 = smov 0  }
   0x5   :  { %s959_s14 = smov 0   ;;  %s961_s15 = smov 0  }
   0x6 LB: > { %s976_s16 = sadd.s32 4294967295, %s922_s15   ;;  %s646_s17 = sadd.s32 4294967294, %s922_s15   ;;  %s922_s15 = sphi %s961_s15, %s1314_s15   ;;  %s918_s14 = sphi %s959_s14, %s1313_s14   ;;  %s914_s13 = sphi %s957_s13, %s1312_s13   ;;  %s910_s12 = sphi %s955_s12, %s1311_s12  }
   0x7   : > { %p40_p0 = scmp.ne.s32.totalorder %s914_s13, %s910_s12  ;;  %p1295_p1 = scmp.eq.s32.totalorder %s976_s16, 0 }
   0x8   : > { %p112_p3 = scmp.eq.s32.totalorder %s646_s17, 1  ;;  %p647_p5 = scmp.ge.s32.totalorder %s922_s15, 1 }
   0x9   : > { %p985_p4 = por %p1295_p1, %p40_p0  ;;  %p119_p7 = scmp.lt.s32.totalorder %s922_s15, 3 }
   0xa   : > { %p990_p6 = por %p112_p3, %p40_p0  ;;  %s924_s21 = smov [#allocation5]  }
   0xb   : > { %s1298_s18 = scalar_select %p985_p4, 1, 0 }
   0xc   : > { %s1299_s19 = scalar_select %p990_p6, 1, 0 }
   0xd   : > { %p995_p8 = pnand %p647_p5, %p119_p7  ;;  %s131_s22 = sshll.u32 %s924_s21, 4  ;;  %s999_s22 = int_to_ptr.vmem [resolvable:$true] %s131_s22 }
   0xe   : > { %s925_s24 = smov [#allocation7]   ;;  %s766_s28 = scalar_lea.hbm %s1292_s1, 1024 }
   0xf   : > { %p704_p9 = pneg %p995_p8  ;;  %s145_s25 = sshll.u32 %s925_s24, 4  ;;  %s1010_s25 = int_to_ptr.vmem [resolvable:$true] %s145_s25 }
  0x10   : > { %p767_p12 = scmp.ne.s32.totalorder %s1292_s1, %s766_s28  ;;  %p773_p5 = scmp.lt.u32.totalorder %s766_s28, %s1292_s1 }
  0x11   : > { %p1006_p11 = pnand %p704_p9, %p1295_p1 }
  0x13   : > { %p768_p13 = pneg %p1006_p11 }
  0x15   : > { %p769_p0 = pnand %p768_p13, %p767_p12 }
  0x17   : > { %p770_p3 = pneg %p769_p0 }
  0x19   : > { %p775_p7 = pnand %p773_p5, %p770_p3 }
  0x1b   : > { %778 = shalt.err (!%p775_p7)
}
  0x1c   : > { %s779_s6 = scalar_lea.vmem %s999_s22, 1024  ;;  %p787_p2 = scmp.lt.s32.totalorder %s999_s22, %s999_s22 }
  0x1d   : > { %p780_p9 = scmp.ne.s32.totalorder %s999_s22, %s779_s6  ;;  %p788_p12 = scmp.lt.s32.totalorder %s779_s6, %s779_s6 }
  0x1f   : > { %p782_p10 = pnand %p780_p9, %p768_p13  ;;  %p789_p0 = por %p788_p12, %p787_p2 }
  0x21   : > { %p783_p1 = pneg %p782_p10 }
  0x23   : > { %p790_p6 = pnand %p789_p0, %p783_p1 }
  0x25   : > { %793 = shalt.err (!%p790_p6)
}
  0x26   : > { %s926_s7 = smov 512   ;;  %s927_s8 = smov 32  }
  0x27   : > { %707 = dma.hbm_to_vmem [thread:$0]  (!%p1006_p11), %s1292_s1, 1024, %s999_s22, [#allocation6], %s926_s7, %s926_s7, %s927_s8  }
  0x28   : > { %s794_s21 = scalar_lea.hbm %s1293_s2, 64 }
  0x29   : > { %p795_p2 = scmp.ne.s32.totalorder %s1293_s2, %s794_s21  ;;  %p801_p10 = scmp.lt.u32.totalorder %s794_s21, %s1293_s2 }
  0x2b   : > { %p797_p1 = pnand %p795_p2, %p768_p13 }
  0x2d   : > { %p798_p6 = pneg %p797_p1 }
  0x2f   : > { %p803_p3 = pnand %p801_p10, %p798_p6 }
  0x31   : > { %806 = shalt.err (!%p803_p3)
}
  0x32   : > { %s807_s22 = scalar_lea.vmem %s1010_s25, 64  ;;  %p815_p12 = scmp.lt.s32.totalorder %s1010_s25, %s1010_s25 }
  0x33   : > { %p808_p5 = scmp.ne.s32.totalorder %s1010_s25, %s807_s22  ;;  %p816_p0 = scmp.lt.s32.totalorder %s807_s22, %s807_s22 }
  0x35   : > { %p810_p7 = pnand %p808_p5, %p768_p13  ;;  %p817_p2 = por %p816_p0, %p815_p12 }
  0x37   : > { %p811_p9 = pneg %p810_p7 }
  0x39   : > { %p818_p1 = pnand %p817_p2, %p811_p9 }
  0x3b   : > { %821 = shalt.err (!%p818_p1)
}
  0x3c   : > { %710 = dma.hbm_to_vmem [thread:$0]  (!%p1006_p11), %s1293_s2, 64, %s1010_s25, [#allocation6]  }
  0x3d   : > { %s1065_s4 = sadd.s32 1, %s922_s15   ;;  %s27_s23 = sadd.s32 1, %s918_s14 }
  0x3e   : > { %s24_s5 = ssub.s32 %s922_s15, %s1065_s4  ;;  %p34_p13 = scmp.ne.s32.totalorder %s918_s14, %s914_s13 }
  0x3f   : > { %p25_p6 = scmp.eq.s32.totalorder %s24_s5, 0  ;;  %p35_p10 = scmp.eq.s32.totalorder %s922_s15, 0 }
  0x40   : > { %p1302_p3 = scmp.eq.s32.totalorder %s976_s16, 1  ;;  %p721_p7 = scmp.lt.s32.totalorder %s922_s15, 2 }
  0x41   : > { %s1081_s7 = scalar_select %p25_p6, %s918_s14, %s27_s23  }
  0x42   : > { %p1075_p5 = por %p1302_p3, %p34_p13  ;;  %p36_p9 = por %p35_p10, %p34_p13 }
  0x43   : > { %s156_s8 = sand.u32 1, %s918_s14   ;;  %s681_s25 = sshll.u32 %s922_s15, 10 }
  0x44   : > { %s1303_s6 = scalar_select %p1075_p5, 1, 0 }
  0x45   : > { %s651_s9 = sshll.u32 %s156_s8, 6  ;;  %s1088_s17 = scalar_lea.hbm %s1291_s0, %s681_s25 }
  0x46   : > { %s160_s21 = scalar_lea.vmem [#allocation2], %s651_s9  ;;  %p1092_p11 = pnand %p721_p7, %p36_p9 }
  0x47   : > { %s167_s24 = sshll.u32 %s160_s21, 4  ;;  %s1096_s27 = scalar_lea.sflag [#allocation3], %s156_s8  ;;  %s1090_s24 = int_to_ptr.vmem [resolvable:$true] %s167_s24 }
  0x48   : > { %s822_s28 = scalar_lea.hbm %s1088_s17, 1024  ;;  %p824_p0 = pneg %p1092_p11 }
  0x49   : > { %p823_p12 = scmp.ne.s32.totalorder %s1088_s17, %s822_s28  ;;  %s827_s30 = scalar_lea.hbm %s1291_s0, 2048 }
  0x4a   : > { %p828_p13 = scmp.lt.u32.totalorder %s1088_s17, %s1291_s0  ;;  %p829_p6 = scmp.lt.u32.totalorder %s827_s30, %s822_s28 }
  0x4b   : > { %p825_p2 = pnand %p824_p0, %p823_p12  ;;  %p831_p3 = scmp.lt.u32.totalorder %s822_s28, %s1088_s17 }
  0x4c   : > { %p830_p10 = por %p829_p6, %p828_p13 }
  0x4d   : > { %p826_p1 = pneg %p825_p2 }
  0x4e   : > { %p832_p7 = por %p831_p3, %p830_p10 }
  0x50   : > { %p833_p9 = pnand %p832_p7, %p826_p1 }
  0x52   : > { %836 = shalt.err (!%p833_p9)
}
  0x53   : > { %s837_s8 = scalar_lea.vmem %s1090_s24, 1024  ;;  %s928_s9 = smov [#allocation2]  }
  0x54   : > { %p838_p12 = scmp.ne.s32.totalorder %s1090_s24, %s837_s8  ;;  %s842_s25 = sshll.u32 %s928_s9, 4  ;;  %s843_s25 = int_to_ptr.vmem [resolvable:$false] %s842_s25 }
  0x55   : > { %s844_s10 = scalar_lea.vmem %s843_s25, 2048  ;;  %p845_p4 = scmp.lt.s32.totalorder %s1090_s24, %s843_s25 }
  0x56   : > { %p840_p2 = pnand %p838_p12, %p824_p0  ;;  %p846_p13 = scmp.lt.s32.totalorder %s844_s10, %s837_s8 }
  0x58   : > { %p841_p5 = pneg %p840_p2  ;;  %p847_p6 = por %p846_p13, %p845_p4 }
  0x5a   : > { %p848_p10 = pnand %p847_p6, %p841_p5 }
  0x5c   : > { %851 = shalt.err (!%p848_p10)
}
  0x5d   : > { %s929_s11 = smov 128   ;;  %s930_s21 = smov 8  }
  0x5e   : > { %714 = dma.hbm_to_vmem [thread:$0]  (!%p1092_p11), %s1088_s17, 1024, %s1090_s24, %s1096_s27, %s929_s11, %s929_s11, %s930_s21  }
  0x5f   : > { %179 = sbr.rel (%p995_p8) target bundleno = 373 (0x175), region = 32  ;;  %s1127_s28 = sand.u32 (!%p995_p8), 1, %s914_s13  }
  0x60   : > { %s655_s22 = sshll.u32 (!%p995_p8), %s1127_s28, 6  ;;  %s182_s29 = scalar_lea.sflag (!%p995_p8), [#allocation3], %s1127_s28 }
  0x61   : > { %s1131_s30 = scalar_lea.vmem (!%p995_p8), [#allocation2], %s655_s22  ;;  %p1305_p4 = scmp.ne.s32.totalorder (!%p995_p8), %s1298_s18, 0 }
  0x66   : > { %897 = dma.done.wait (%p1305_p4), %s182_s29, 1024  }
  0x67   : > { %899 = vsyncadd (%p1305_p4), %s182_s29, 4294966272  ;;  %p1306_p5 = scmp.eq.s32.totalorder %s976_s16, 0 }
  0x69   : > { %901 = dma.done.wait (%p1306_p5), [#allocation6], 1088   ;;  %p1307_p8 = pmov %p1306_p5 }
  0x6a   : > { %v931_v0 = vmov 0.0   ;;  %v219_v1 = vld [vmem:[#allocation5 + $0x8] sm:$0xff]  ;;  %v221_v3 = vld [vmem:[#allocation5 + $0x18] sm:$0xff]  ;;  %v218_v6 = vld [vmem:[#allocation5] sm:$0xff]  ;;  %vm256_vm0 = vcmask 130048   ;;  %v236_v21 = vlaneseq  ;;  %s658_s18 = sshll.u32 %s1127_s28, 8 }
  0x6b   : > { %903 = vsyncadd (%p1307_p8), [#allocation6], 4294966208  ;;  %345 = vmatprep.mubr.f32.mxu0 %v931_v0  ;;  %458 = vmatprep.mubr.f32.mxu1 %v931_v0  ;;  %v223_v2 = vld [vmem:[#allocation5 + $0x28] sm:$0xff]  ;;  %v225_v5 = vld [vmem:[#allocation5 + $0x38] sm:$0xff]  ;;  %s1177_s20 = scalar_lea.vmem [#allocation8], %s658_s18  ;;  %s683_s17 = sshll.u32 %s976_s16, 12 }
  0x6c   : > { %v684_v4 = vpack.c.bf16 %v223_v2, %v219_v1  ;;  %v222_v7 = vld [vmem:[#allocation5 + $0x20] sm:$0xff]  ;;  %v688_v8 = vpack.c.bf16 %v225_v5, %v221_v3  ;;  %v220_v10 = vld [vmem:[#allocation5 + $0x10] sm:$0xff]  ;;  %v227_v14 = vld [vmem:[%s1131_s30 + $0x8] sm:$0xff]  ;;  %v237_v22 = vshrl.u32 %v236_v21, 7  ;;  %s554_s24 = sshll.u32 %s1177_s20, 4  ;;  %s1240_s27 = scalar_lea.hbm %s1294_s3, %s683_s17  ;;  %s1242_s24 = int_to_ptr.vmem [resolvable:$true] %s554_s24 }
  0x6d   : > { %v686_v9 = vpack.c.bf16 %v222_v7, %v218_v6  ;;  %v224_v11 = vld [vmem:[#allocation5 + $0x30] sm:$0xff]  ;;  %v226_v13 = vld [vmem:[%s1131_s30] sm:$0xff]  ;;  %v229_v16 = vld [vmem:[%s1131_s30 + $0x18] sm:$0xff]  ;;  %s540_s23 = scalar_lea.sflag [#allocation4], %s1127_s28  ;;  %s852_s5 = scalar_lea.vmem %s1242_s24, 4096 }
  0x6e   : > { %685 = vmatprep.subr.bf16.mxu0 %v684_v4  ;;  %v690_v12 = vpack.c.bf16 %v224_v11, %v220_v10  ;;  %689 = vmatprep.subr.bf16.mxu1 %v688_v8  ;;  %v228_v15 = vld [vmem:[%s1131_s30 + $0x10] sm:$0xff]  ;;  %v230_v17 = vld [vmem:[%s1131_s30 + $0x20] sm:$0xff]  ;;  %v231_v18 = vld [vmem:[%s1131_s30 + $0x28] sm:$0xff]  ;;  %v238_v23 = vsub.s32 0, %v237_v22  ;;  %v246_v25 = vsub.s32 2, %v237_v22  ;;  %v242_v26 = vsub.s32 1, %v237_v22  ;;  %p853_p11 = scmp.ne.s32.totalorder %s1242_s24, %s852_s5 }
  0x6f   : > { %687 = vmatpush1.bf16.msra.mxu0 %v686_v9  ;;  %v232_v19 = vld [vmem:[%s1131_s30 + $0x30] sm:$0xff]  ;;  %v233_v20 = vld [vmem:[%s1131_s30 + $0x38] sm:$0xff]  ;;  %v234_v24 = vld [vmem:[#allocation7] sm:$0xf]  ;;  %v250_v27 = vsub.s32 3, %v237_v22  ;;  %p1308_p0 = scmp.ne.s32.totalorder %s1303_s6, 0 }
  0x70   : > { %691 = vmatpush1.bf16.msra.mxu1 %v690_v12  ;;  %v1166_v28 = vrot.slane %v234_v24, %v238_v23  ;;  %v1168_v29 = vrot.slane %v234_v24, %v246_v25  ;;  %v1170_v30 = vrot.slane %v234_v24, %v242_v26  ;;  %s932_s8 = smov [#allocation8]  }
  0x71   : > { %v1172_v31 = vrot.slane %v234_v24, %v250_v27  ;;  %p854_p1 = pnand %p853_p11, %p1308_p0  ;;  %s856_s9 = sshll.u32 %s932_s8, 4  ;;  %s857_s9 = int_to_ptr.vmem [resolvable:$false] %s856_s9 }
  0x72   : > { %659 = vmatmul.mubr.msk.f32.vlgmr.msra.gmra.mrb[0].mxu0 %vm256_vm0, %v226_v13  ;;  %s858_s25 = scalar_lea.vmem %s857_s9, 8192  ;;  %p859_p7 = scmp.lt.s32.totalorder %s1242_s24, %s857_s9 }
  0x73   : > { %667 = vmatmul.mubr.msk.f32.vlgmr.msra.gmra.mrb[0].mxu1 %vm256_vm0, %v226_v13  ;;  %351 = vmatprep.mubr.f32.mxu0 %v931_v0  ;;  %p855_p3 = pneg %p854_p1  ;;  %p860_p9 = scmp.lt.s32.totalorder %s858_s25, %s852_s5 }
  0x74   : > { %464 = vmatprep.mubr.f32.mxu1 %v931_v0 }
  0x75   : > { %p861_p12 = por %p860_p9, %p859_p7 }
  0x76   : > { %660 = vmatmul.mubr.msk.f32.gmra.mrb[2].mxu0 %vm256_vm0, %v227_v14 }
  0x77   : > { %668 = vmatmul.mubr.msk.f32.gmra.mrb[2].mxu1 %vm256_vm0, %v227_v14  ;;  %357 = vmatprep.mubr.f32.mxu0 %v931_v0  ;;  %p862_p2 = pnand %p861_p12, %p855_p3 }
  0x78   : > { %470 = vmatprep.mubr.f32.mxu1 %v931_v0 }
  0x7a   : > { %661 = vmatmul.mubr.msk.f32.gmra.mrb[4].mxu0 %vm256_vm0, %v228_v15 }
  0x7b   : > { %669 = vmatmul.mubr.msk.f32.gmra.mrb[4].mxu1 %vm256_vm0, %v228_v15  ;;  %363 = vmatprep.mubr.f32.mxu0 %v931_v0 }
  0x7c   : > { %476 = vmatprep.mubr.f32.mxu1 %v931_v0 }
  0x7e   : > { %662 = vmatmul.mubr.msk.f32.gmra.mrb[6].mxu0 %vm256_vm0, %v229_v16 }
  0x7f   : > { %670 = vmatmul.mubr.msk.f32.gmra.mrb[6].mxu1 %vm256_vm0, %v229_v16  ;;  %369 = vmatprep.mubr.f32.mxu0 %v931_v0 }
  0x80   : > { %482 = vmatprep.mubr.f32.mxu1 %v931_v0 }
  0x82   : > { %663 = vmatmul.mubr.msk.f32.gmra.mrb[8].mxu0 %vm256_vm0, %v230_v17 }
  0x83   : > { %671 = vmatmul.mubr.msk.f32.gmra.mrb[8].mxu1 %vm256_vm0, %v230_v17  ;;  %375 = vmatprep.mubr.f32.mxu0 %v931_v0 }
  0x84   : > { %488 = vmatprep.mubr.f32.mxu1 %v931_v0 }
  0x86   : > { %664 = vmatmul.mubr.msk.f32.gmra.mrb[10].mxu0 %vm256_vm0, %v231_v18 }
  0x87   : > { %672 = vmatmul.mubr.msk.f32.gmra.mrb[10].mxu1 %vm256_vm0, %v231_v18  ;;  %381 = vmatprep.mubr.f32.mxu0 %v931_v0 }
  0x88   : > { %494 = vmatprep.mubr.f32.mxu1 %v931_v0 }
  0x8a   : > { %665 = vmatmul.mubr.msk.f32.gmra.mrb[12].mxu0 %vm256_vm0, %v232_v19 }
  0x8b   : > { %673 = vmatmul.mubr.msk.f32.gmra.mrb[12].mxu1 %vm256_vm0, %v232_v19  ;;  %387 = vmatprep.mubr.f32.mxu0 %v931_v0 }
  0x8c   : > { %500 = vmatprep.mubr.f32.mxu1 %v931_v0 }
  0x8e   : > { %666 = vmatmul.mubr.msk.f32.gmra.mrb[14].mxu0 %vm256_vm0, %v233_v20 }
  0x8f   : > { %674 = vmatmul.mubr.msk.f32.gmra.mrb[14].mxu1 %vm256_vm0, %v233_v20 }
 0x145   : > { %v347_v32 = vpop.f32.mrb[0].mxu0 }
 0x146   : > { %v348_v33 = vadd.f32 %v347_v32, %v1166_v28  ;;  %v460_v34 = vpop.f32.mrb[0].mxu1  ;;  %v349_v35 = vpop.f32.mrb[1].mxu0 }
 0x147   : > { %v461_v36 = vadd.f32 %v460_v34, %v1168_v29  ;;  %v350_v37 = vadd.f32 %v349_v35, %v1170_v30  ;;  %v462_v38 = vpop.f32.mrb[1].mxu1 }
 0x148   : > { %507 = vst [vmem:[%s1177_s20] sm:$0xff] %v348_v33  ;;  %v463_v39 = vadd.f32 %v462_v38, %v1172_v31 }
 0x149   : > { %509 = vst [vmem:[%s1177_s20 + $0x10] sm:$0xff] %v461_v36  ;;  %508 = vst [vmem:[%s1177_s20 + $0x8] sm:$0xff] %v350_v37  ;;  %v353_v40 = vpop.f32.mrb[2].mxu0 }
 0x14a   : > { %510 = vst [vmem:[%s1177_s20 + $0x18] sm:$0xff] %v463_v39  ;;  %v354_v41 = vadd.f32 %v353_v40, %v1166_v28  ;;  %v466_v42 = vpop.f32.mrb[2].mxu1  ;;  %v355_v43 = vpop.f32.mrb[3].mxu0 }
 0x14b   : > { %v467_v44 = vadd.f32 %v466_v42, %v1168_v29  ;;  %v356_v45 = vadd.f32 %v355_v43, %v1170_v30  ;;  %v468_v46 = vpop.f32.mrb[3].mxu1 }
 0x14c   : > { %511 = vst [vmem:[%s1177_s20 + $0x20] sm:$0xff] %v354_v41  ;;  %v469_v47 = vadd.f32 %v468_v46, %v1172_v31 }
 0x14d   : > { %513 = vst [vmem:[%s1177_s20 + $0x30] sm:$0xff] %v467_v44  ;;  %512 = vst [vmem:[%s1177_s20 + $0x28] sm:$0xff] %v356_v45  ;;  %v359_v48 = vpop.f32.mrb[4].mxu0 }
 0x14e   : > { %514 = vst [vmem:[%s1177_s20 + $0x38] sm:$0xff] %v469_v47  ;;  %v360_v49 = vadd.f32 %v359_v48, %v1166_v28  ;;  %v472_v50 = vpop.f32.mrb[4].mxu1  ;;  %v361_v51 = vpop.f32.mrb[5].mxu0 }
 0x14f   : > { %v473_v52 = vadd.f32 %v472_v50, %v1168_v29  ;;  %v362_v53 = vadd.f32 %v361_v51, %v1170_v30  ;;  %v474_v54 = vpop.f32.mrb[5].mxu1 }
 0x150   : > { %515 = vst [vmem:[%s1177_s20 + $0x40] sm:$0xff] %v360_v49  ;;  %v475_v55 = vadd.f32 %v474_v54, %v1172_v31 }
 0x151   : > { %517 = vst [vmem:[%s1177_s20 + $0x50] sm:$0xff] %v473_v52  ;;  %516 = vst [vmem:[%s1177_s20 + $0x48] sm:$0xff] %v362_v53  ;;  %v365_v56 = vpop.f32.mrb[6].mxu0 }
 0x152   : > { %518 = vst [vmem:[%s1177_s20 + $0x58] sm:$0xff] %v475_v55  ;;  %v366_v57 = vadd.f32 %v365_v56, %v1166_v28  ;;  %v478_v58 = vpop.f32.mrb[6].mxu1  ;;  %v367_v59 = vpop.f32.mrb[7].mxu0 }
 0x153   : > { %v479_v60 = vadd.f32 %v478_v58, %v1168_v29  ;;  %v368_v61 = vadd.f32 %v367_v59, %v1170_v30  ;;  %v480_v62 = vpop.f32.mrb[7].mxu1 }
 0x154   : > { %519 = vst [vmem:[%s1177_s20 + $0x60] sm:$0xff] %v366_v57  ;;  %v481_v63 = vadd.f32 %v480_v62, %v1172_v31 }
 0x155   : > { %521 = vst [vmem:[%s1177_s20 + $0x70] sm:$0xff] %v479_v60  ;;  %520 = vst [vmem:[%s1177_s20 + $0x68] sm:$0xff] %v368_v61  ;;  %v371_v0 = vpop.f32.mrb[8].mxu0 }
 0x156   : > { %522 = vst [vmem:[%s1177_s20 + $0x78] sm:$0xff] %v481_v63  ;;  %v372_v1 = vadd.f32 %v371_v0, %v1166_v28  ;;  %v484_v2 = vpop.f32.mrb[8].mxu1  ;;  %v373_v3 = vpop.f32.mrb[9].mxu0 }
 0x157   : > { %v485_v4 = vadd.f32 %v484_v2, %v1168_v29  ;;  %v374_v5 = vadd.f32 %v373_v3, %v1170_v30  ;;  %v486_v6 = vpop.f32.mrb[9].mxu1 }
 0x158   : > { %523 = vst [vmem:[%s1177_s20 + $0x80] sm:$0xff] %v372_v1  ;;  %v487_v7 = vadd.f32 %v486_v6, %v1172_v31 }
 0x159   : > { %525 = vst [vmem:[%s1177_s20 + $0x90] sm:$0xff] %v485_v4  ;;  %524 = vst [vmem:[%s1177_s20 + $0x88] sm:$0xff] %v374_v5  ;;  %v377_v8 = vpop.f32.mrb[10].mxu0 }
 0x15a   : > { %526 = vst [vmem:[%s1177_s20 + $0x98] sm:$0xff] %v487_v7  ;;  %v378_v9 = vadd.f32 %v377_v8, %v1166_v28  ;;  %v490_v10 = vpop.f32.mrb[10].mxu1  ;;  %v379_v11 = vpop.f32.mrb[11].mxu0 }
 0x15b   : > { %v491_v12 = vadd.f32 %v490_v10, %v1168_v29  ;;  %v380_v13 = vadd.f32 %v379_v11, %v1170_v30  ;;  %v492_v14 = vpop.f32.mrb[11].mxu1 }
 0x15c   : > { %527 = vst [vmem:[%s1177_s20 + $0xa0] sm:$0xff] %v378_v9  ;;  %v493_v15 = vadd.f32 %v492_v14, %v1172_v31 }
 0x15d   : > { %529 = vst [vmem:[%s1177_s20 + $0xb0] sm:$0xff] %v491_v12  ;;  %528 = vst [vmem:[%s1177_s20 + $0xa8] sm:$0xff] %v380_v13  ;;  %v383_v16 = vpop.f32.mrb[12].mxu0 }
 0x15e   : > { %530 = vst [vmem:[%s1177_s20 + $0xb8] sm:$0xff] %v493_v15  ;;  %v384_v17 = vadd.f32 %v383_v16, %v1166_v28  ;;  %v496_v18 = vpop.f32.mrb[12].mxu1  ;;  %v385_v19 = vpop.f32.mrb[13].mxu0 }
 0x15f   : > { %v497_v20 = vadd.f32 %v496_v18, %v1168_v29  ;;  %v386_v21 = vadd.f32 %v385_v19, %v1170_v30  ;;  %v498_v22 = vpop.f32.mrb[13].mxu1 }
 0x160   : > { %531 = vst [vmem:[%s1177_s20 + $0xc0] sm:$0xff] %v384_v17  ;;  %v499_v23 = vadd.f32 %v498_v22, %v1172_v31 }
 0x161   : > { %533 = vst [vmem:[%s1177_s20 + $0xd0] sm:$0xff] %v497_v20  ;;  %532 = vst [vmem:[%s1177_s20 + $0xc8] sm:$0xff] %v386_v21  ;;  %v389_v24 = vpop.f32.mrb[14].mxu0 }
 0x162   : > { %534 = vst [vmem:[%s1177_s20 + $0xd8] sm:$0xff] %v499_v23  ;;  %v390_v25 = vadd.f32 %v389_v24, %v1166_v28  ;;  %v502_v26 = vpop.f32.mrb[14].mxu1  ;;  %v391_v27 = vpop.f32.mrb[15].mxu0 }
 0x163   : > { %v503_v32 = vadd.f32 %v502_v26, %v1168_v29  ;;  %v392_v33 = vadd.f32 %v391_v27, %v1170_v30  ;;  %v504_v34 = vpop.f32.mrb[15].mxu1 }
 0x164   : > { %535 = vst [vmem:[%s1177_s20 + $0xe0] sm:$0xff] %v390_v25  ;;  %v505_v28 = vadd.f32 %v504_v34, %v1172_v31 }
 0x165   : > { %537 = vst [vmem:[%s1177_s20 + $0xf0] sm:$0xff] %v503_v32  ;;  %536 = vst [vmem:[%s1177_s20 + $0xe8] sm:$0xff] %v392_v33 }
 0x166   : > { %538 = vst [vmem:[%s1177_s20 + $0xf8] sm:$0xff] %v505_v28 }
 0x167   : > { %865 = shalt.err (!%p862_p2)
}
 0x168   : > { %s866_s10 = scalar_lea.hbm %s1240_s27, 4096  ;;  %s870_s22 = scalar_lea.hbm %s1294_s3, 8192 }
 0x169   : > { %p867_p13 = scmp.ne.s32.totalorder %s1240_s27, %s866_s10  ;;  %p871_p4 = scmp.lt.u32.totalorder %s1240_s27, %s1294_s3 }
 0x16a   : > { %p872_p5 = scmp.lt.u32.totalorder %s870_s22, %s866_s10  ;;  %p874_p11 = scmp.lt.u32.totalorder %s866_s10, %s1240_s27 }
 0x16b   : > { %p868_p6 = pnand %p867_p13, %p1308_p0 }
 0x16c   : > { %p873_p8 = por %p872_p5, %p871_p4 }
 0x16d   : > { %p869_p10 = pneg %p868_p6 }
 0x16e   : > { %p875_p1 = por %p874_p11, %p873_p8 }
 0x170   : > { %p876_p3 = pnand %p875_p1, %p869_p10 }
 0x172   : > { %879 = shalt.err (!%p876_p3)
}
 0x173   : > { %s933_s18 = smov 512   ;;  %s934_s20 = smov 32  }
 0x174   : > { %702 = dma.vmem_to_hbm [thread:$0]  (%p1308_p0), %s1242_s24, 4096, %s1240_s27, %s540_s23, %s933_s18, %s933_s18, %s934_s20  }
 0x175 PF: > { %s569_s17 = sand.u32 1, %s910_s12   ;;  %p1309_p7 = scmp.ne.s32.totalorder %s1299_s19, 0 }
 0x176   : > { %p1310_p9 = scmp.ge.s32.totalorder %s922_s15, 2  ;;  %s570_s16 = scalar_lea.sflag [#allocation4], %s569_s17 }
 0x178   : > { %p716_p12 = pnand %p1310_p9, %p1309_p7 }
 0x17a   : > { %905 = dma.done.wait (!%p716_p12), %s570_s16, 4096  }
 0x17b   : > { %907 = vsyncadd (!%p716_p12), %s570_s16, 4294963200  ;;  %p17_p2 = scmp.ge.s32.totalorder %s1065_s4, 4   ;;  %s1311_s12 = smov %s914_s13 }
 0x17c   : > { %s1312_s13 = smov %s918_s14  ;;  %s1313_s14 = smov %s1081_s7 }
 0x17d   : > { %s1314_s15 = smov %s1065_s4  ;;  %19 = sbr.rel (!%p17_p2) target bundleno = 6 (0x6), region = 85 }
 0x184   :  { %575 = vsyncpa [#allocation3], 1 }
 0x185   :  { %577 = vsyncpa [#allocation3 + $0x1], 1 }
 0x186   :  { %578 = vsyncpa [#allocation6], 1 }
 0x187   :  { %579 = vsyncpa [#allocation4], 1 }
 0x188   :  { %581 = vsyncpa [#allocation4 + $0x1], 1 }

</bundles_post_ra>
